<compile_context>
chip_gen: v6e
topology: v6e:2x2x1
jax: 0.10.0
libtpu: 0.0.40
codegen_flags: <defaults>
</compile_context>

<pallas_src>
import jax
import jax.numpy as jnp
from jax.experimental import pallas as pl
from jax.experimental.pallas import tpu as pltpu

_LANES = 128
_SUBLANES = 8
_MAX_TILE_ROWS = 512  # (512, 128) f32 tile = 256 KiB; ~85% of HBM roofline on v6e


def _round_up(v, m):
    return ((v + m - 1) // m) * m


def _sharpe_kernel(a_ref, b_ref, x0_ref, x1_ref, o_ref):
    # a_ref, b_ref: SMEM (1,) scalars; x0/x1/o: VMEM (tile_rows, 128) tiles.
    a = a_ref[0]
    b = b_ref[0]
    x0 = x0_ref[...]
    o_ref[...] = a * x0 * x0 + b * x1_ref[...]


def _halfplane_kernel(a_ref, b_ref, x0_ref, x1_ref, o_ref):
    a = a_ref[0]
    b = b_ref[0]
    o_ref[...] = a * x0_ref[...] - a * x1_ref[...] + b


def net_forward(name, a, b, c, x, y):
    """Mirror of Net.forward(x, y).

    a, b, c: shape (1,) float32 parameters (c is unused, as in the module).
    x, y:    (batch, 2) float32 (y is unused, as in the module).
    Returns: (batch,) float32, matching the PyTorch return shape.
    """
    del y, c  # unused in the PyTorch forward

    if name in ("sharpe1", "sharpe2"):
        kern = _sharpe_kernel
    elif name == "halfplane":
        kern = _halfplane_kernel
    else:
        raise ValueError(f"unsupported name: {name}")

    x = x.astype(jnp.float32)
    a = a.reshape((1,)).astype(jnp.float32)
    b = b.reshape((1,)).astype(jnp.float32)
    batch = x.shape[0]

    # Lane-dense re-layout: batch element k -> (row k // 128, lane k % 128).
    rows = _round_up(max(pl.cdiv(batch, _LANES), 1), _SUBLANES)
    tile_rows = min(_MAX_TILE_ROWS, rows)
    rows = _round_up(rows, tile_rows)          # no partial grid blocks
    padded = rows * _LANES

    xp = jnp.zeros((padded, 2), jnp.float32).at[:batch].set(x)
    x0 = xp[:, 0].reshape(rows, _LANES)
    x1 = xp[:, 1].reshape(rows, _LANES)

    tile_spec = pl.BlockSpec((tile_rows, _LANES), lambda i: (i, 0))

    out = pl.pallas_call(
        kern,
        out_shape=jax.ShapeDtypeStruct((rows, _LANES), jnp.float32),
        grid=(rows // tile_rows,),
        in_specs=[
            pl.BlockSpec(memory_space=pltpu.SMEM),  # a, untiled scalar
            pl.BlockSpec(memory_space=pltpu.SMEM),  # b, untiled scalar
            tile_spec,                              # x0 plane
            tile_spec,                              # x1 plane
        ],
        out_specs=tile_spec,
        compiler_params=pltpu.CompilerParams(
            dimension_semantics=("parallel",),
        ),
        cost_estimate=pl.CostEstimate(
            flops=3 * padded,           # mul+mul+add (sharpe) / mul+mul+add+add
            transcendentals=0,
            bytes_accessed=12 * padded,  # 2 f32 in + 1 f32 out per element
        ),
    )(a, b, x0, x1)

    # Padded tail (zero inputs) is sliced off; no mask needed.
    return out.reshape(padded)[:batch]


if __name__ == "__main__":
    key = jax.random.PRNGKey(0)
    ka, kb, kc, kx, ky = jax.random.split(key, 5)

    # nn.init.uniform_(nn.Parameter(torch.empty(1))) -> uniform [0, 1), shape (1,)
    a = jax.random.uniform(ka, (1,), jnp.float32)
    b = jax.random.uniform(kb, (1,), jnp.float32)
    c = jax.random.uniform(kc, (1,), jnp.float32)

    # Small, non-multiple-of-128 batch to exercise the pad/slice path.
    batch = 300
    x = jax.random.normal(kx, (batch, 2), jnp.float32)
    y = jax.random.normal(ky, (batch, 2), jnp.float32)

    out_sharpe = net_forward("sharpe1", a, b, c, x, y)
    out_half = net_forward("halfplane", a, b, c, x, y)
    jax.block_until_ready((out_sharpe, out_half))

    # Reference check (pure JAX)
    ref_sharpe = a[0] * x[:, 0] ** 2 + b[0] * x[:, 1]
    ref_half = a[0] * x[:, 0] - a[0] * x[:, 1] + b[0]
    assert out_sharpe.shape == (batch,) and out_half.shape == (batch,)
    assert jnp.allclose(out_sharpe, ref_sharpe, atol=1e-5, rtol=1e-5)
    assert jnp.allclose(out_half, ref_half, atol=1e-5, rtol=1e-5)

    # TODO(synk): get_barrier() is symbolic (sympy) and has no Pallas equivalent.
    print("KERNEL_OK")
</pallas_src>

<mosaic_0001>
module attributes {stable_mosaic.version = 11 : i64} {
  func.func @_sharpe_kernel(%arg0: i32, %arg1: memref<1xf32, #tpu.memory_space<smem>>, %arg2: memref<1xf32, #tpu.memory_space<smem>>, %arg3: memref<8x128xf32, #tpu.memory_space<vmem>>, %arg4: memref<8x128xf32, #tpu.memory_space<vmem>>, %arg5: memref<8x128xf32, #tpu.memory_space<vmem>>) attributes {dimension_semantics = [#tpu.dimension_semantics<parallel>], iteration_bounds = array<i64: 1>, scalar_prefetch = 0 : i64, scratch_operands = 0 : i64, tpu.core_type = #tpu.core_type<tc>, window_params = [{transform_indices = @transform_0, window_bounds = array<i64: 1>}, {transform_indices = @transform_1, window_bounds = array<i64: 1>}, {transform_indices = @transform_2, window_bounds = array<i64: 8, 128>}, {transform_indices = @transform_3, window_bounds = array<i64: 8, 128>}, {transform_indices = @transform_4, window_bounds = array<i64: 8, 128>}]} {
    %c0 = arith.constant 0 : index
    %0 = memref.load %arg1[%c0] : memref<1xf32, #tpu.memory_space<smem>>
    %c0_0 = arith.constant 0 : index
    %1 = memref.load %arg2[%c0_0] : memref<1xf32, #tpu.memory_space<smem>>
    %c0_1 = arith.constant 0 : index
    %c0_2 = arith.constant 0 : index
    %2 = vector.load %arg3[%c0_1, %c0_2] : memref<8x128xf32, #tpu.memory_space<vmem>>, vector<8x128xf32>
    %3 = vector.broadcast %0 : f32 to vector<8x128xf32>
    %4 = arith.mulf %3, %2 : vector<8x128xf32>
    %5 = arith.mulf %4, %2 : vector<8x128xf32>
    %c0_3 = arith.constant 0 : index
    %c0_4 = arith.constant 0 : index
    %6 = vector.load %arg4[%c0_3, %c0_4] : memref<8x128xf32, #tpu.memory_space<vmem>>, vector<8x128xf32>
    %7 = vector.broadcast %1 : f32 to vector<8x128xf32>
    %8 = arith.mulf %7, %6 : vector<8x128xf32>
    %9 = arith.addf %5, %8 : vector<8x128xf32>
    %c0_5 = arith.constant 0 : index
    %c0_6 = arith.constant 0 : index
    %10 = vector.load %arg5[%c0_5, %c0_6] : memref<8x128xf32, #tpu.memory_space<vmem>>, vector<8x128xf32>
    tpu.vector_store %arg5[%c0_5, %c0_6], %9 {strides = array<i32>} : memref<8x128xf32, #tpu.memory_space<vmem>>, vector<8x128xf32>,
    return
  }
  func.func @transform_0(%arg0: i32) -> i32 {
    %c0_i32 = arith.constant 0 : i32
    %c0_i32_0 = arith.constant 0 : i32
    return %c0_i32 : i32
  }
  func.func @transform_1(%arg0: i32) -> i32 {
    %c0_i32 = arith.constant 0 : i32
    %c0_i32_0 = arith.constant 0 : i32
    return %c0_i32 : i32
  }
  func.func @transform_2(%arg0: i32) -> (i32, i32) {
    %c0_i32 = arith.constant 0 : i32
    %c0_i32_0 = arith.constant 0 : i32
    return %arg0, %c0_i32 : i32, i32
  }
  func.func @transform_3(%arg0: i32) -> (i32, i32) {
    %c0_i32 = arith.constant 0 : i32
    %c0_i32_0 = arith.constant 0 : i32
    return %arg0, %c0_i32 : i32, i32
  }
  func.func @transform_4(%arg0: i32) -> (i32, i32) {
    %c0_i32 = arith.constant 0 : i32
    %c0_i32_0 = arith.constant 0 : i32
    return %arg0, %c0_i32 : i32, i32
  }
}

</mosaic_0001>

<bundles_post_ra>
// kernel: tpu_custom_call.1
= control target key start
LH: loop header
LB: loop body
LE: loop exit
PB: predicated region body
PF: predicated region fallthrough
CT: control target
= control target key end

     0   :  { %11 = vsyncpa [#allocation5], 0  ;;  %s183_s0 = inlined_call_operand.<no memory space> [shape: f32[1], index: 0, kind: input, shape index: {}]   ;;  %s184_s1 = inlined_call_operand.<no memory space> [shape: f32[1], index: 1, kind: input, shape index: {}]   ;;  %s185_s2 = inlined_call_operand.hbm [shape: f32[8,128], index: 2, kind: input, shape index: {}]   ;;  %s186_s3 = inlined_call_operand.hbm [shape: f32[8,128], index: 3, kind: input, shape index: {}]   ;;  %s187_s4 = inlined_call_operand.hbm [shape: f32[8,128], index: 4, kind: output, shape index: {}]  }
   0x1   :  { %12 = vsyncpa [#allocation8], 0 }
   0x2   :  { %13 = vsyncpa [#allocation6], 0  ;;  %s140_s15 = smov [#allocation4]   ;;  %s141_s17 = smov [#allocation7]  }
   0x3   :  { %s24_s16 = sshll.u32 %s140_s15, 4  ;;  %s34_s18 = sshll.u32 %s141_s17, 4  ;;  %s25_s16 = int_to_ptr.vmem [resolvable:$true] %s24_s16  ;;  %s35_s18 = int_to_ptr.vmem [resolvable:$true] %s34_s18 }
   0x4   :  { %s82_s19 = scalar_lea.vmem %s25_s16, 128  ;;  %p87_p1 = scmp.lt.s32.totalorder %s25_s16, %s25_s16 }
   0x5   :  { %p83_p0 = scmp.ne.s32.totalorder %s25_s16, %s82_s19  ;;  %p88_p2 = scmp.lt.s32.totalorder %s82_s19, %s82_s19 }
   0x7   :  { %p89_p3 = por %p88_p2, %p87_p1 }
   0x9   :  { %p90_p4 = pnand %p89_p3, %p83_p0 }
   0xb   :  { %93 = shalt.err (!%p90_p4)
}
   0xc   :  { %27 = dma.hbm_to_vmem [thread:$0]  %s185_s2, 128, %s25_s16, [#allocation5]  }
   0xd   :  { %s102_s22 = scalar_lea.vmem %s35_s18, 128  ;;  %p107_p6 = scmp.lt.s32.totalorder %s35_s18, %s35_s18 }
   0xe   :  { %p103_p5 = scmp.ne.s32.totalorder %s35_s18, %s102_s22  ;;  %p108_p7 = scmp.lt.s32.totalorder %s102_s22, %s102_s22 }
  0x10   :  { %p109_p8 = por %p108_p7, %p107_p6 }
  0x12   :  { %p110_p9 = pnand %p109_p8, %p103_p5 }
  0x14   :  { %113 = shalt.err (!%p110_p9)
}
  0x15   :  { %37 = dma.hbm_to_vmem [thread:$0]  %s186_s3, 128, %s35_s18, [#allocation8]  }
  0x16   :  { %134 = dma.done.wait [#allocation5], 128  }
  0x17   :  { %135 = vsyncadd [#allocation5], 4294967168 }
  0x18   :  { %136 = dma.done.wait [#allocation8], 128  }
  0x19   :  { %137 = vsyncadd [#allocation8], 4294967168  ;;  %v47_v0 = vstv %s183_s0  ;;  %v51_v1 = vstv %s184_s1  ;;  %v46_v2 = vld [vmem:[#allocation4] sm:$0xff]  ;;  %v50_v3 = vld [vmem:[#allocation7] sm:$0xff]  ;;  %s142_s28 = smov [#allocation9]  }
  0x1a   :  { %v48_v4 = vmul.f32 %v47_v0, %v46_v2  ;;  %v52_v5 = vmul.f32 %v51_v1, %v50_v3  ;;  %s61_s29 = sshll.u32 %s142_s28, 4  ;;  %s62_s29 = int_to_ptr.vmem [resolvable:$true] %s61_s29 }
  0x1b   :  { %s114_s3 = scalar_lea.vmem %s62_s29, 128  ;;  %p119_p11 = scmp.lt.s32.totalorder %s62_s29, %s62_s29 }
  0x1c   :  { %v49_v6 = vmul.f32 %v48_v4, %v46_v2  ;;  %p115_p10 = scmp.ne.s32.totalorder %s62_s29, %s114_s3  ;;  %p120_p12 = scmp.lt.s32.totalorder %s114_s3, %s114_s3 }
  0x1e   :  { %v53_v7 = vadd.f32 %v52_v5, %v49_v6  ;;  %p121_p13 = por %p120_p12, %p119_p11 }
  0x20   :  { %54 = vst [vmem:[#allocation9] sm:$0xff] %v53_v7  ;;  %p122_p0 = pnand %p121_p13, %p115_p10 }
  0x22   :  { %125 = shalt.err (!%p122_p0)
}
  0x23   :  { %64 = dma.vmem_to_hbm [thread:$0]  %s62_s29, 128, %s187_s4, [#allocation6]  }
  0x24   :  { %138 = dma.done.wait [#allocation6], 128  }
  0x25   :  { %139 = vsyncadd [#allocation6], 4294967168 }
  0x26   :  { %68 = vsyncpa [#allocation5], 1 }
  0x27   :  { %69 = vsyncpa [#allocation8], 1 }
  0x28   :  { %70 = vsyncpa [#allocation6], 1 }

</bundles_post_ra>
